<compile_context>
chip_gen: v7x
topology: tpu7x:2x2x1
jax: 0.10.0
libtpu: 0.0.40
codegen_flags: <defaults>
</compile_context>

<pallas_src>
import functools

import jax
import jax.numpy as jnp
from jax.experimental import pallas as pl
from jax.experimental.pallas import tpu as pltpu


def _focal_loss_kernel(logits_ref, targets_ref, cw_ref, loss_ref, *, gamma):
    # logits: (C, TILE_N) f32 — classes on sublanes, samples on lanes.
    x = logits_ref[...]
    t = targets_ref[...]          # (1, TILE_N) int32
    cw = cw_ref[...]              # (1, TILE_N) f32 (0.0 on padded samples)

    # class-index rows; mask selects the target logit per sample.
    rows = jax.lax.broadcasted_iota(jnp.int32, x.shape, 0)
    mask = rows == t                                            # (C, TILE_N)

    # numerically-stable cross entropy per sample: ce = logsumexp(x) - x[target]
    m = jnp.max(x, axis=0, keepdims=True)                       # (1, TILE_N)
    lse = m + jnp.log(jnp.sum(jnp.exp(x - m), axis=0, keepdims=True))
    tgt_logit = jnp.sum(jnp.where(mask, x, 0.0), axis=0, keepdims=True)
    ce = lse - tgt_logit                                        # (1, TILE_N)

    # focal modulation (alpha and 1/N are folded into the wrapper's scale).
    pt = jnp.exp(-ce)
    base = jnp.maximum(1.0 - pt, 0.0)                           # clamp rounding
    if float(gamma).is_integer() and gamma >= 0:
        focal_w = jax.lax.integer_pow(base, int(gamma))         # VALU only
    else:
        focal_w = base ** jnp.float32(gamma)                    # general fallback

    loss_ref[...] = focal_w * cw * ce                           # lane-dense store


def focal_loss(predictions, targets, class_weights, alpha=1.0, gamma=2.0):
    """predictions: (N, C) float32 logits; targets: (N,) int; class_weights: dict."""
    n, c = predictions.shape

    # Class-weight table (default 1.0, like torch.ones_like(ce_loss)).
    table = [1.0] * c
    for label, w in class_weights.items():
        if 0 <= int(label) < c:
            table[int(label)] = float(w)
    cw_table = jnp.asarray(table, dtype=jnp.float32)

    # Tile size: lane-dense multiple of 128, capped so one (C, TILE_N) f32
    # block stays ~<= 2 MiB even when C is large (safe for v7x's 64 MiB VMEM).
    max_tile = max(128, ((2 * 1024 * 1024) // (4 * c)) // 128 * 128)
    n_pad128 = pl.cdiv(n, 128) * 128
    tile_n = min(max_tile, 1024, n_pad128)
    n_padded = pl.cdiv(n, tile_n) * tile_n
    num_tiles = n_padded // tile_n

    targets_i32 = targets.astype(jnp.int32)
    # Per-sample class weight gathered in the wrapper (removes the in-kernel
    # one-hot multiply + XLU reduce). Out-of-range targets are clamped for the
    # gather only; padded samples get weight 0 so they contribute nothing.
    cw_samples = cw_table[jnp.clip(targets_i32, 0, c - 1)]

    logits_t = (
        jnp.zeros((c, n_padded), jnp.float32)
        .at[:, :n].set(predictions.astype(jnp.float32).T)
    )
    targets_p = jnp.zeros((1, n_padded), jnp.int32).at[0, :n].set(targets_i32)
    cw_p = jnp.zeros((1, n_padded), jnp.float32).at[0, :n].set(cw_samples)

    kernel = functools.partial(_focal_loss_kernel, gamma=float(gamma))

    per_sample = pl.pallas_call(
        kernel,
        out_shape=jax.ShapeDtypeStruct((1, n_padded), jnp.float32),
        grid=(num_tiles,),
        in_specs=[
            pl.BlockSpec((c, tile_n), lambda i: (0, i)),   # logits (transposed)
            pl.BlockSpec((1, tile_n), lambda i: (0, i)),   # targets
            pl.BlockSpec((1, tile_n), lambda i: (0, i)),   # per-sample class wt
        ],
        out_specs=pl.BlockSpec((1, tile_n), lambda i: (0, i)),
        compiler_params=pltpu.CompilerParams(
            dimension_semantics=("parallel",)),
    )(logits_t, targets_p, cw_p)

    # Final reduction + fold alpha and 1/N into a single scale.
    return jnp.sum(per_sample) * jnp.float32(float(alpha) / n)


def _reference_focal_loss(predictions, targets, class_weights, alpha=1.0, gamma=2.0):
    """Pure-JAX reference mirroring the PyTorch module."""
    lse = jax.nn.logsumexp(predictions, axis=-1)
    ce = lse - jnp.take_along_axis(
        predictions, targets[:, None].astype(jnp.int32), axis=-1
    )[:, 0]
    pt = jnp.exp(-ce)
    focal_w = alpha * (1.0 - pt) ** gamma
    cw = jnp.ones_like(ce)
    for label, w in class_weights.items():
        cw = jnp.where(targets == label, jnp.float32(w), cw)
    return jnp.mean(focal_w * cw * ce)


if __name__ == "__main__":
    # Small synthetic problem: 16 samples, 8 classes.
    N, C = 16, 8
    key = jax.random.PRNGKey(0)
    k1, k2 = jax.random.split(key)
    predictions = jax.random.normal(k1, (N, C), dtype=jnp.float32)
    targets = jax.random.randint(k2, (N,), 0, C, dtype=jnp.int32)

    # Deterministic class-weight dict (as __init__ would receive).
    class_weights = {0: 2.0, 1: 0.5, 3: 4.0, 7: 1.5}
    alpha, gamma = 1.0, 2.0

    out = focal_loss(predictions, targets, class_weights, alpha, gamma)
    out = jax.block_until_ready(out)

    ref = _reference_focal_loss(predictions, targets, class_weights, alpha, gamma)
    assert jnp.allclose(out, ref, rtol=1e-5, atol=1e-5), (out, ref)

    print("KERNEL_OK")
</pallas_src>

<mosaic_0001>
module attributes {stable_mosaic.version = 11 : i64} {
  func.func @_focal_loss_kernel(%arg0: i32, %arg1: memref<8x128xf32, #tpu.memory_space<vmem>>, %arg2: memref<1x128xi32, #tpu.memory_space<vmem>>, %arg3: memref<1x128xf32, #tpu.memory_space<vmem>>, %arg4: memref<1x128xf32, #tpu.memory_space<vmem>>) attributes {dimension_semantics = [#tpu.dimension_semantics<parallel>], iteration_bounds = array<i64: 1>, scalar_prefetch = 0 : i64, scratch_operands = 0 : i64, tpu.core_type = #tpu.core_type<tc>, window_params = [{transform_indices = @transform_0, window_bounds = array<i64: 8, 128>}, {transform_indices = @transform_1, window_bounds = array<i64: 1, 128>}, {transform_indices = @transform_2, window_bounds = array<i64: 1, 128>}, {transform_indices = @transform_3, window_bounds = array<i64: 1, 128>}]} {
    %c0 = arith.constant 0 : index
    %c0_0 = arith.constant 0 : index
    %0 = vector.load %arg1[%c0, %c0_0] : memref<8x128xf32, #tpu.memory_space<vmem>>, vector<8x128xf32>
    %c0_1 = arith.constant 0 : index
    %c0_2 = arith.constant 0 : index
    %1 = vector.load %arg2[%c0_1, %c0_2] : memref<1x128xi32, #tpu.memory_space<vmem>>, vector<1x128xi32>
    %c0_3 = arith.constant 0 : index
    %c0_4 = arith.constant 0 : index
    %2 = vector.load %arg3[%c0_3, %c0_4] : memref<1x128xf32, #tpu.memory_space<vmem>>, vector<1x128xf32>
    %3 = tpu.iota {dimensions = array<i32: 0>} : vector<8x128xi32>
    %4 = vector.broadcast %1 : vector<1x128xi32> to vector<8x128xi32>
    %5 = arith.cmpi eq, %3, %4 : vector<8x128xi32>
    %cst = arith.constant dense<0xFF800000> : vector<128xf32>
    %6 = vector.multi_reduction <maximumf>, %0, %cst [0] : vector<8x128xf32> to vector<128xf32>
    %7 = vector.shape_cast %6 : vector<128xf32> to vector<1x128xf32>
    %8 = vector.broadcast %7 : vector<1x128xf32> to vector<8x128xf32>
    %9 = arith.subf %0, %8 : vector<8x128xf32>
    %10 = math.exp %9 : vector<8x128xf32>
    %cst_5 = arith.constant dense<0.000000e+00> : vector<128xf32>
    %11 = vector.multi_reduction <add>, %10, %cst_5 [0] : vector<8x128xf32> to vector<128xf32>
    %12 = vector.shape_cast %11 : vector<128xf32> to vector<1x128xf32>
    %13 = math.log %12 : vector<1x128xf32>
    %14 = arith.addf %7, %13 : vector<1x128xf32>
    %cst_6 = arith.constant 0.000000e+00 : f32
    %15 = vector.broadcast %cst_6 : f32 to vector<8x128xf32>
    %16 = arith.select %5, %0, %15 : vector<8x128xi1>, vector<8x128xf32>
    %cst_7 = arith.constant dense<0.000000e+00> : vector<128xf32>
    %17 = vector.multi_reduction <add>, %16, %cst_7 [0] : vector<8x128xf32> to vector<128xf32>
    %18 = vector.shape_cast %17 : vector<128xf32> to vector<1x128xf32>
    %19 = arith.subf %14, %18 : vector<1x128xf32>
    %cst_8 = arith.constant 0.000000e+00 : f32
    %20 = vector.broadcast %cst_8 : f32 to vector<1x128xf32>
    %21 = arith.subf %20, %19 : vector<1x128xf32>
    %22 = math.exp %21 : vector<1x128xf32>
    %cst_9 = arith.constant 1.000000e+00 : f32
    %23 = vector.broadcast %cst_9 : f32 to vector<1x128xf32>
    %24 = arith.subf %23, %22 : vector<1x128xf32>
    %cst_10 = arith.constant 0.000000e+00 : f32
    %25 = vector.broadcast %cst_10 : f32 to vector<1x128xf32>
    %26 = arith.maximumf %24, %25 : vector<1x128xf32>
    %27 = arith.mulf %26, %26 : vector<1x128xf32>
    %28 = arith.mulf %27, %2 : vector<1x128xf32>
    %29 = arith.mulf %28, %19 : vector<1x128xf32>
    %c0_11 = arith.constant 0 : index
    %c0_12 = arith.constant 0 : index
    %30 = vector.load %arg4[%c0_11, %c0_12] : memref<1x128xf32, #tpu.memory_space<vmem>>, vector<1x128xf32>
    tpu.vector_store %arg4[%c0_11, %c0_12], %29 {strides = array<i32>} : memref<1x128xf32, #tpu.memory_space<vmem>>, vector<1x128xf32>,
    return
  }
  func.func @transform_0(%arg0: i32) -> (i32, i32) {
    %c0_i32 = arith.constant 0 : i32
    %c0_i32_0 = arith.constant 0 : i32
    return %c0_i32, %arg0 : i32, i32
  }
  func.func @transform_1(%arg0: i32) -> (i32, i32) {
    %c0_i32 = arith.constant 0 : i32
    %c0_i32_0 = arith.constant 0 : i32
    return %c0_i32, %arg0 : i32, i32
  }
  func.func @transform_2(%arg0: i32) -> (i32, i32) {
    %c0_i32 = arith.constant 0 : i32
    %c0_i32_0 = arith.constant 0 : i32
    return %c0_i32, %arg0 : i32, i32
  }
  func.func @transform_3(%arg0: i32) -> (i32, i32) {
    %c0_i32 = arith.constant 0 : i32
    %c0_i32_0 = arith.constant 0 : i32
    return %c0_i32, %arg0 : i32, i32
  }
}

</mosaic_0001>

<bundles_post_ra>
// kernel: tpu_custom_call.1
= control target key start
LH: loop header
LB: loop body
LE: loop exit
PB: predicated region body
PF: predicated region fallthrough
CT: control target
= control target key end

     0   :  { %8 = vsyncpa [#allocation3], 0  ;;  %s196_s0 = inlined_call_operand.hbm [shape: f32[8,128], index: 0, kind: input, shape index: {}]   ;;  %s197_s1 = inlined_call_operand.vmem [shape: s32[1,128], index: 1, kind: input, shape index: {}]   ;;  %s198_s2 = inlined_call_operand.vmem [shape: f32[1,128], index: 2, kind: input, shape index: {}]   ;;  %s199_s3 = inlined_call_operand.hbm [shape: f32[1,128], index: 3, kind: output, shape index: {}]  }
   0x1   :  { %9 = vsyncpa [#allocation4], 0  ;;  %s144_s12 = smov [#allocation2]   ;;  %s96_s16 = scalar_lea.hbm %s196_s0, 128 }
   0x2   :  { %s16_s13 = sshll.u32 %s144_s12, 4  ;;  %p97_p0 = scmp.ne.s32.totalorder %s196_s0, %s96_s16  ;;  %s17_s13 = int_to_ptr.vmem [resolvable:$true] %s16_s13 }
   0x3   :  { %p100_p1 = scmp.lt.u32.totalorder %s96_s16, %s196_s0 }
   0x5   :  { %p102_p2 = pnand %p100_p1, %p97_p0 }
   0x7   :  { %105 = shalt.err (!%p102_p2)
}
   0x8   :  { %s106_s21 = scalar_lea.vmem %s17_s13, 128  ;;  %p111_p4 = scmp.lt.s32.totalorder %s17_s13, %s17_s13 }
   0x9   :  { %p107_p3 = scmp.ne.s32.totalorder %s17_s13, %s106_s21  ;;  %p112_p5 = scmp.lt.s32.totalorder %s106_s21, %s106_s21 }
   0xb   :  { %p113_p6 = por %p112_p5, %p111_p4 }
   0xd   :  { %p114_p7 = pnand %p113_p6, %p107_p3 }
   0xf   :  { %117 = shalt.err (!%p114_p7)
}
  0x10   :  { %19 = dma.hbm_to_vmem [thread:$0]  %s196_s0, 128, %s17_s13, [#allocation3]  }
  0x11   :  { %140 = dma.done.wait [#allocation3], 128  }
  0x12   :  { %141 = vsyncadd [#allocation3], 4294967168  ;;  %v27_v0 = vld [vmem:[#allocation2] sm:$0xff]  ;;  %v30_v9 = vlaneseq  ;;  %s145_s26 = smov [#allocation5]  }
  0x13   :  { %v37_v1 = vrot.slane %v27_v0, 4  ;;  %v87_v11 = vld [vmem:[%s197_s1] ss:$0 sm:$0xff]  ;;  %s78_s27 = sshll.u32 %s145_s26, 4  ;;  %s79_s27 = int_to_ptr.vmem [resolvable:$true] %s78_s27 }
  0x14   :  { %v31_v10 = vshrl.u32 %v30_v9, 7  ;;  %v29_v35 = vld [vmem:[%s198_s2] sm:$0x1]  ;;  %s118_s28 = scalar_lea.vmem %s79_s27, 16  ;;  %s122_s29 = scalar_lea.vmem %s79_s27, 32 }
  0x15   :  { %v38_v2 = vmax.f32 %v27_v0, %v37_v1  ;;  %p119_p8 = scmp.ne.s32.totalorder %s79_s27, %s118_s28  ;;  %p123_p9 = scmp.lt.s32.totalorder %s79_s27, %s79_s27 }
  0x16   :  { %vm36_vm0 = vcmp.eq.s32.totalorder %v31_v10, %v87_v11  ;;  %p124_p10 = scmp.lt.s32.totalorder %s122_s29, %s118_s28 }
  0x17   :  { %v39_v3 = vrot.slane %v38_v2, 2  ;;  %v55_v14 = vsel %vm36_vm0, %v27_v0, 0.0 }
  0x18   :  { %v56_v16 = vrot.slane %v55_v14, 4  ;;  %p125_p11 = por %p124_p10, %p123_p9 }
  0x19   :  { %v40_v4 = vmax.f32 %v38_v2, %v39_v3 }
  0x1a   :  { %v57_v19 = vadd.f32 %v56_v16, %v55_v14  ;;  %p126_p12 = pnand %p125_p11, %p119_p8 }
  0x1b   :  { %v41_v5 = vrot.slane %v40_v4, 1 }
  0x1c   :  { %v58_v22 = vrot.slane %v57_v19, 2 }
  0x1d   :  { %v42_v6 = vmax.f32 %v40_v4, %v41_v5 }
  0x1e   :  { %v59_v23 = vadd.f32 %v58_v22, %v57_v19 }
  0x1f   :  { %v43_v7 = vsub.f32 %v27_v0, %v42_v6 }
  0x20   :  { %v60_v24 = vrot.slane %v59_v23, 1 }
  0x21   :  { %v44_v8 = vmul.f32 1.442695, %v43_v7 }
  0x22   :  { %v61_v27 = vadd.f32 %v60_v24, %v59_v23 }
  0x23   :  { %90 = vpow2.f32 %v44_v8 }
  0x2d   :  { %v91_v12 = vpop.eup %90 }
  0x2e   :  { %v46_v13 = vrot.slane %v91_v12, 4 }
  0x30   :  { %v47_v15 = vadd.f32 %v91_v12, %v46_v13 }
  0x32   :  { %v48_v17 = vrot.slane %v47_v15, 2 }
  0x34   :  { %v49_v18 = vadd.f32 %v48_v17, %v47_v15 }
  0x36   :  { %v50_v20 = vrot.slane %v49_v18, 1 }
  0x38   :  { %v51_v21 = vadd.f32 %v50_v20, %v49_v18 }
  0x3a   :  { %92 = vlog2.f32 %v51_v21 }
  0x44   :  { %v93_v25 = vpop.eup %92 }
  0x45   :  { %v53_v26 = vmul.f32 0.6931472, %v93_v25 }
  0x47   :  { %v54_v28 = vadd.f32 %v53_v26, %v42_v6 }
  0x49   :  { %v62_v29 = vsub.f32 %v54_v28, %v61_v27 }
  0x4b   :  { %v63_v30 = vsub.f32 0.0, %v62_v29 }
  0x4d   :  { %v64_v31 = vmul.f32 1.442695, %v63_v30 }
  0x4f   :  { %94 = vpow2.f32 %v64_v31 }
  0x59   :  { %v95_v32 = vpop.eup %94 }
  0x5a   :  { %v66_v33 = vsub.f32 1.0, %v95_v32 }
  0x5c   :  { %v67_v34 = vmax.f32 %v66_v33, 0.0 }
  0x5e   :  { %v68_v36 = vmul.f32 %v67_v34, %v67_v34 }
  0x60   :  { %v69_v37 = vmul.f32 %v68_v36, %v29_v35 }
  0x62   :  { %v70_v38 = vmul.f32 %v69_v37, %v62_v29 }
  0x64   :  { %71 = vst [vmem:[#allocation5] sm:$0x1] %v70_v38 }
  0x65   :  { %129 = shalt.err (!%p126_p12)
}
  0x66   :  { %s130_s5 = scalar_lea.hbm %s199_s3, 16 }
  0x67   :  { %p131_p13 = scmp.ne.s32.totalorder %s199_s3, %s130_s5  ;;  %p134_p0 = scmp.lt.u32.totalorder %s130_s5, %s199_s3 }
  0x69   :  { %p136_p1 = pnand %p134_p0, %p131_p13 }
  0x6b   :  { %139 = shalt.err (!%p136_p1)
}
  0x6c   :  { %81 = dma.vmem_to_hbm [thread:$0]  %s79_s27, 16, %s199_s3, [#allocation4]  }
  0x6d   :  { %142 = dma.done.wait [#allocation4], 16  }
  0x6e   :  { %143 = vsyncadd [#allocation4], 4294967280 }
  0x6f   :  { %85 = vsyncpa [#allocation3], 1 }
  0x70   :  { %86 = vsyncpa [#allocation4], 1 }

</bundles_post_ra>
